<compile_context>
chip_gen: v5e
topology: v5e:2x2
jax: 0.10.0
libtpu: 0.0.40
codegen_flags: <defaults>
</compile_context>

<pallas_src>
import functools
import math

import jax
import jax.numpy as jnp
from jax import lax
from jax.experimental import pallas as pl
from jax.experimental.pallas import tpu as pltpu


# Set by a tiny runtime probe in __main__; True means pltpu.roll follows
# jnp.roll semantics (out[i] = x[i - shift]).
_ROLL_MATCHES_JNP = True


def _round_up(v, m):
    return (v + m - 1) // m * m


def _roll_lanes(a, k):
    """out[..., i] = a[..., (i - k) % n]  (jnp.roll semantics on the lane dim)."""
    n = a.shape[-1]
    k = k % n
    if not _ROLL_MATCHES_JNP:
        k = (n - k) % n
    return pltpu.roll(a, k, a.ndim - 1)


# ---------------------------------------------------------------------------
# Fused kernel: [ReflectionPad(1) + Conv3x3 + bias + GroupNorm(1) + ReLU] x 2
# ---------------------------------------------------------------------------
def _conv_pair_kernel(m_ref, x_ref, w1_ref, bgb1_ref, w2_ref, bgb2_ref, o_ref,
                      *, W):
    # m_ref:    (4, HW)        border masks [col==0, col==W-1, row==0, row==H-1]
    # x_ref:    (1, Cin_p, HW) bf16 input tile for one sample (channel-major)
    # w*_ref:   (Cout, 9*Cin)  bf16 conv weights, column = (ky*3+kx)*Cin + cin
    # bgb*_ref: (Cout, 3)      f32 [conv bias | GN gamma | GN beta]
    # o_ref:    (1, Cout2, HW) f32 output tile
    eps = 1e-5
    col0 = m_ref[0:1, :] > 0.5
    colL = m_ref[1:2, :] > 0.5
    row0 = m_ref[2:3, :] > 0.5
    rowL = m_ref[3:4, :] > 0.5

    def conv3x3(y, w_ref):
        """3x3 conv with ReflectionPad2d(1) on a (C, H*W) channel-major tile."""
        C, hw = y.shape
        srW = _roll_lanes(y, W)          # pixel from row-1 (wrap fixed by mask)
        slW = _roll_lanes(y, -W)         # pixel from row+1
        bases = (
            jnp.where(row0, slW, srW),   # ky=0: row-1, reflected at row 0
            y,                           # ky=1
            jnp.where(rowL, srW, slW),   # ky=2: row+1, reflected at row H-1
        )
        acc = jnp.zeros((w_ref.shape[0], hw), jnp.float32)
        for i, base in enumerate(bases):
            sr1 = _roll_lanes(base, 1)   # pixel from col-1
            sl1 = _roll_lanes(base, -1)  # pixel from col+1
            taps = (
                jnp.where(col0, sl1, sr1),   # kx=0: col-1, reflected at col 0
                base,                        # kx=1
                jnp.where(colL, sr1, sl1),   # kx=2: col+1, reflected at col W-1
            )
            for j, tap in enumerate(taps):
                k = 3 * i + j
                acc = acc + jnp.dot(w_ref[:, k * C:(k + 1) * C], tap,
                                    preferred_element_type=jnp.float32)
        return acc                                         # (Cout, HW) f32

    def gn_relu(acc, bgb_ref):
        acc = acc + bgb_ref[:, 0:1]                        # conv bias (pre-GN)
        n = float(acc.shape[0] * acc.shape[1])
        s = jnp.sum(acc)                                   # one-pass stats
        ss = jnp.sum(acc * acc)
        mean = s / n
        var = ss / n - mean * mean
        inv = lax.rsqrt(var + eps)                         # EUP
        y = (acc - mean) * (inv * bgb_ref[:, 1:2]) + bgb_ref[:, 2:3]
        return jnp.maximum(y, 0.0)                         # ReLU

    x = x_ref[0]                                           # (Cin_p, HW) bf16
    y1 = gn_relu(conv3x3(x, w1_ref), bgb1_ref)             # stays on-chip
    y2 = gn_relu(conv3x3(y1.astype(jnp.bfloat16), w2_ref), bgb2_ref)
    o_ref[0] = y2.astype(o_ref.dtype)


def _border_masks(H, W):
    idx = jnp.arange(H * W, dtype=jnp.int32)
    col = idx % W
    row = idx // W
    m = jnp.stack([col == 0, col == W - 1, row == 0, row == H - 1], axis=0)
    return m.astype(jnp.float32)                           # (4, H*W)


def conv_pair(x, pp):
    """Two fused (ReflectPad + Conv3x3 + GroupNorm(1) + ReLU) blocks. x: NCHW f32."""
    N, Cin, H, W = x.shape
    HW = H * W
    w1, bgb1 = pp["c1"]["w"], pp["c1"]["bgb"]
    w2, bgb2 = pp["c2"]["w"], pp["c2"]["bgb"]
    C1, K1 = w1.shape
    C2, K2 = w2.shape
    cin_p = K1 // 9
    assert K2 == 9 * C1, "second conv weights must match intermediate channels"
    assert cin_p >= Cin

    if cin_p != Cin:                                       # keep K = 9*Cin 8-aligned
        x = jnp.pad(x, ((0, 0), (0, cin_p - Cin), (0, 0), (0, 0)))
    xf = x.reshape(N, cin_p, HW).astype(jnp.bfloat16)      # lane-dense, half the DMA
    masks = _border_masks(H, W)

    flops = 2 * N * HW * (K1 * C1 + K2 * C2)
    bytes_accessed = ((masks.size + bgb1.size + bgb2.size + N * C2 * HW) * 4
                      + (xf.size + w1.size + w2.size) * 2)

    out = pl.pallas_call(
        functools.partial(_conv_pair_kernel, W=W),
        out_shape=jax.ShapeDtypeStruct((N, C2, HW), jnp.float32),
        grid=(N,),
        in_specs=[
            pl.BlockSpec((4, HW), lambda n: (0, 0)),
            pl.BlockSpec((1, cin_p, HW), lambda n: (n, 0, 0)),
            pl.BlockSpec((C1, K1), lambda n: (0, 0)),
            pl.BlockSpec((C1, 3), lambda n: (0, 0)),
            pl.BlockSpec((C2, K2), lambda n: (0, 0)),
            pl.BlockSpec((C2, 3), lambda n: (0, 0)),
        ],
        out_specs=pl.BlockSpec((1, C2, HW), lambda n: (n, 0, 0)),
        compiler_params=pltpu.CompilerParams(
            dimension_semantics=("parallel",)),
        cost_estimate=pl.CostEstimate(flops=int(flops), transcendentals=2 * N,
                                      bytes_accessed=int(bytes_accessed)),
    )(masks, xf, w1, bgb1, w2, bgb2)
    return out.reshape(N, C2, H, W)


# ---------------------------------------------------------------------------
# Plain-XLA glue (PyTorch-equivalent semantics).
# TODO(synk): MaxPool2d / bilinear upsample / channel concat intentionally stay
#             in XLA; they are cheap glue between the fused conv-pair kernels.
# ---------------------------------------------------------------------------
def maxpool_3x3_s2(x):
    """MaxPool2d(kernel_size=3, stride=2, padding=1), NCHW."""
    return lax.reduce_window(
        x, -jnp.inf, lax.max,
        window_dimensions=(1, 1, 3, 3),
        window_strides=(1, 1, 2, 2),
        padding=((0, 0), (0, 0), (1, 1), (1, 1)),
    )


def upsample_bilinear_2x(x):
    """F.interpolate(scale_factor=2, mode='bilinear', align_corners=False), NCHW."""
    N, C, H, W = x.shape

    def idx_w(size):
        src = (jnp.arange(2 * size, dtype=jnp.float32) + 0.5) / 2.0 - 0.5
        src = jnp.maximum(src, 0.0)                        # PyTorch clamps negatives
        i0 = jnp.minimum(jnp.floor(src).astype(jnp.int32), size - 1)
        i1 = jnp.minimum(i0 + 1, size - 1)
        w1 = src - i0.astype(jnp.float32)
        return i0, i1, 1.0 - w1, w1

    hi0, hi1, hw0, hw1 = idx_w(H)
    wi0, wi1, ww0, ww1 = idx_w(W)
    xh = (x[:, :, hi0, :] * hw0[None, None, :, None]
          + x[:, :, hi1, :] * hw1[None, None, :, None])
    xhw = (xh[:, :, :, wi0] * ww0[None, None, None, :]
           + xh[:, :, :, wi1] * ww1[None, None, None, :])
    return xhw


# ---------------------------------------------------------------------------
# Parameter init (deterministic synthetic) and recursive UNet forward.
# ---------------------------------------------------------------------------
def init_conv(key, cin, cout, cin_pad=None):
    """Conv3x3 + GroupNorm(1, cout) params in kernel layout.

    Weight matrix is (cout, 9*cin_pad) with column = (ky*3+kx)*cin_pad + cin.
    NOTE: to load a real PyTorch Conv2d weight (cout, cin, kh, kw), use
          w.permute(0, 2, 3, 1).reshape(cout, 9*cin) and then zero-pad cin.
    """
    cin_pad = cin if cin_pad is None else cin_pad
    k1, k2, k3, k4 = jax.random.split(key, 4)
    w = jax.random.normal(k1, (3, 3, cin, cout), jnp.float32) / math.sqrt(9.0 * cin)
    if cin_pad != cin:
        w = jnp.pad(w, ((0, 0), (0, 0), (0, cin_pad - cin), (0, 0)))
    wmat = jnp.transpose(w, (3, 0, 1, 2)).reshape(cout, 9 * cin_pad)
    b = 0.01 * jax.random.normal(k2, (cout,), jnp.float32)
    gamma = 1.0 + 0.1 * jax.random.normal(k3, (cout,), jnp.float32)
    beta = 0.1 * jax.random.normal(k4, (cout,), jnp.float32)
    return dict(w=wmat.astype(jnp.bfloat16),
                bgb=jnp.stack([b, gamma, beta], axis=1))   # (cout, 3) f32


def init_pair(key, cin, cmid, cout):
    k1, k2 = jax.random.split(key)
    return dict(c1=init_conv(k1, cin, cmid, cin_pad=_round_up(cin, 8)),
                c2=init_conv(k2, cmid, cout))


def init_unet(key, cin, c0, cout, nlayers):
    k_pre, k_post, k_proc = jax.random.split(key, 3)
    params = dict(pre=init_pair(k_pre, cin, c0, c0),
                  post=init_pair(k_post, 3 * c0, c0, cout))
    if nlayers > 1:
        params["process"] = init_unet(k_proc, c0, 2 * c0, 2 * c0, nlayers - 1)
    else:
        params["process"] = init_pair(k_proc, c0, 2 * c0, 2 * c0)
    return params


def unet_forward(params, x, nlayers):
    """x: NCHW. Mirrors UNet.forward: pre -> maxpool -> process -> upsample -> post."""
    features = conv_pair(x, params["pre"])
    lower_scale = maxpool_3x3_s2(features)
    if nlayers > 1:
        lower_features = unet_forward(params["process"], lower_scale, nlayers - 1)
    else:
        lower_features = conv_pair(lower_scale, params["process"])
    upsampled = upsample_bilinear_2x(lower_features)
    return conv_pair(jnp.concatenate([features, upsampled], axis=1), params["post"])


def _probe_roll_semantics():
    """Check whether compiled pltpu.roll matches jnp.roll (out[i] = x[i - shift])."""
    x = jnp.arange(8 * 128, dtype=jnp.float32).reshape(8, 128)

    def kern(x_ref, o_ref):
        o_ref[...] = pltpu.roll(x_ref[...], 1, 1)

    y = pl.pallas_call(kern, out_shape=jax.ShapeDtypeStruct((8, 128), jnp.float32))(x)
    return bool(jnp.array_equal(y, jnp.roll(x, 1, axis=1)))


# ---------------------------------------------------------------------------
if __name__ == "__main__":
    # Pin the hardware lane-rotate sign convention before tracing the network.
    _ROLL_MATCHES_JNP = _probe_roll_semantics()

    # Small UNet-consistent shapes: batch=2, cin=4, c0=8, cout=4, nlayers=2.
    # Spatial 32x32 keeps H*W a multiple of 128 lanes at both pyramid levels.
    N, CIN, C0, COUT, NLAYERS, H, W = 2, 4, 8, 4, 2, 32, 32

    key = jax.random.PRNGKey(0)
    k_x, k_p = jax.random.split(key)
    x = jax.random.normal(k_x, (N, CIN, H, W), jnp.float32)   # NCHW (PyTorch layout)
    params = init_unet(k_p, CIN, C0, COUT, NLAYERS)

    fwd = jax.jit(functools.partial(unet_forward, nlayers=NLAYERS))
    out = fwd(params, x)
    jax.block_until_ready(out)
    assert out.shape == (N, COUT, H, W), out.shape
    print("KERNEL_OK")
</pallas_src>

<mosaic_0001>
module attributes {stable_mosaic.version = 11 : i64} {
  func.func @kern(%arg0: memref<8x128xf32, #tpu.memory_space<vmem>>, %arg1: memref<8x128xf32, #tpu.memory_space<vmem>>) attributes {dimension_semantics = [], scalar_prefetch = 0 : i64, scratch_operands = 0 : i64, tpu.core_type = #tpu.core_type<tc>} {
    %c0 = arith.constant 0 : index
    %c0_0 = arith.constant 0 : index
    %0 = vector.load %arg0[%c0, %c0_0] : memref<8x128xf32, #tpu.memory_space<vmem>>, vector<8x128xf32>
    %c1_i32 = arith.constant 1 : i32
    %1 = tpu.dynamic_rotate %0 by %c1_i32 dim 1 : vector<8x128xf32>, i32 -> vector<8x128xf32>
    %c0_1 = arith.constant 0 : index
    %c0_2 = arith.constant 0 : index
    %2 = vector.load %arg1[%c0_1, %c0_2] : memref<8x128xf32, #tpu.memory_space<vmem>>, vector<8x128xf32>
    tpu.vector_store %arg1[%c0_1, %c0_2], %1 {strides = array<i32>} : memref<8x128xf32, #tpu.memory_space<vmem>>, vector<8x128xf32>,
    return
  }
}

</mosaic_0001>

<bundles_post_ra>
// kernel: tpu_custom_call.1
= control target key start
LH: loop header
LB: loop body
LE: loop exit
PB: predicated region body
PF: predicated region fallthrough
CT: control target
= control target key end

     0   :  { %6 = vsyncpa [#allocation3], 0  ;;  %s118_s0 = inlined_call_operand.hbm [shape: f32[8,128], index: 0, kind: input, shape index: {}]   ;;  %s119_s1 = inlined_call_operand.hbm [shape: f32[8,128], index: 1, kind: output, shape index: {}]  }
   0x1   :  { %7 = vsyncpa [#allocation4], 0  ;;  %s13_s8 = sshll.u32 %s118_s0, 4  ;;  %s99_s9 = smov [#allocation2]   ;;  %s14_s8 = int_to_ptr.hbm [resolvable:$true] %s13_s8 }
   0x2   :  { %s15_s10 = sshll.u32 %s99_s9, 4  ;;  %s16_s10 = int_to_ptr.vmem [resolvable:$true] %s15_s10 }
   0x3   :  { %18 = dma.hbm_to_vmem [thread:$0]  %s14_s8, 128, %s16_s10, [#allocation3]  }
   0x4   :  { %95 = dma.done.wait [#allocation3], 128  }
   0x5   :  { %96 = vsyncadd [#allocation3], 4294967168  ;;  %v23_v0 = vld [vmem:[#allocation2] sm:$0xff]  ;;  %s100_s11 = smov 1   ;;  %s101_s12 = smov [#allocation5]  }
   0x6   :  { %24 = vrot.lane.b32.xlu0 %v23_v0, %s100_s11  ;;  %s32_s13 = sshll.u32 %s101_s12, 4  ;;  %s34_s16 = sshll.u32 %s119_s1, 4  ;;  %s33_s13 = int_to_ptr.vmem [resolvable:$true] %s32_s13  ;;  %s35_s16 = int_to_ptr.hbm [resolvable:$true] %s34_s16 }
  0x78   :  { %v25_v1 = vpop.permute.xlu0 %24 }
  0x79   :  { %26 = vst [vmem:[#allocation5] sm:$0xff] %v25_v1 }
  0x7a   :  { %37 = dma.vmem_to_hbm [thread:$0]  %s33_s13, 128, %s35_s16, [#allocation4]  }
  0x7b   :  { %97 = dma.done.wait [#allocation4], 128  }
  0x7c   :  { %98 = vsyncadd [#allocation4], 4294967168 }
  0x7d   :  { %42 = vsyncpa [#allocation3], 1 }
  0x7e   :  { %43 = vsyncpa [#allocation4], 1 }

</bundles_post_ra>
